<compile_context>
chip_gen: v6e
topology: v6e:2x2x1
jax: 0.10.0
libtpu: 0.0.40
codegen_flags: <defaults>
</compile_context>

<pallas_src>
import functools

import jax
import jax.numpy as jnp
from jax.experimental import pallas as pl
from jax.experimental.pallas import tpu as pltpu


# ---------------------------------------------------------------------------
# Stage 1: per-node attention scores  ->  s of shape (1, Np)
#   s[j] = leakyrelu(| sign(node_adj)[j, :] @ (h @ W_att) | @ a)
#   ((A>0)@X - (A<0)@X == sign(A)@X, bit-exact) -- one fused matmul per tile.
# ---------------------------------------------------------------------------
def gat_scores_kernel(nadj_ref, h_att_ref, a_t_ref, s_ref, *,
                      alpha, apply_sign, mxu_dtype):
    nadj = nadj_ref[...]                              # (TN, Np) adjacency row tile
    h_att = h_att_ref[...]                            # (Np, F_out), resident
    a_t = a_t_ref[...]                                # (1, F_out), resident

    lhs = jnp.sign(nadj) if apply_sign else nadj      # precondition: already {-1,0,1}
    a_input = jnp.abs(
        jnp.dot(lhs.astype(mxu_dtype), h_att.astype(mxu_dtype),
                preferred_element_type=jnp.float32))  # (TN, F_out)

    # contract against the feature axis so the result is lane-major: (1, TN)
    s = jax.lax.dot_general(a_t, a_input, (((1,), (1,)), ((), ())),
                            preferred_element_type=jnp.float32)
    s_ref[...] = jnp.where(s > 0, s, alpha * s)       # LeakyReLU


# ---------------------------------------------------------------------------
# Stage 2: row-tiled masked softmax + attention-weighted aggregation
#   attention = softmax(where(edge_adj != 0, s, -9e15), axis=1)
#   h_prime   = (attention * edge_adj) @ h          (emitted transposed)
# ---------------------------------------------------------------------------
def gat_attention_kernel(exp_s_ref, eadj_ref, h_ref, hprime_t_ref, *att_out,
                         mxu_dtype, inv_n):
    exp_s = exp_s_ref[...]                            # (1, Np) f32, resident
    eadj = eadj_ref[...]                              # (TN, Np) edge_adj row tile
    h = h_ref[...]                                    # (Np, F_in), resident

    mask = eadj != 0                                  # (TN, Np)
    p = jnp.where(mask, exp_s, 0.0)                   # masked exp (broadcast select)
    denom = jnp.sum(p, axis=1, keepdims=True)         # (TN, 1)
    has_edges = denom > 0.0
    # approximate reciprocal runs on the EUP slot (off the VALU critical path);
    # guard rows with no edges (reference gives uniform 1/N att, zero h_prime).
    recip = jnp.where(has_edges, pl.reciprocal(denom, approx=True), 0.0)

    # signed numerator: exp_s * edge_adj is already zero wherever edge_adj == 0,
    # so no extra select is needed before the MXU.
    weighted = (exp_s * eadj.astype(jnp.float32)) * recip        # (TN, Np)

    # TODO(synk): nn.Dropout(p=0.5) on attention is eval-mode identity here.
    # transposed matmul -> (F_in, TN): output lane dim TN >= 128 => dense stores
    hprime_t_ref[...] = jax.lax.dot_general(
        h.astype(mxu_dtype), weighted.astype(mxu_dtype),
        (((0,), (1,)), ((), ())), preferred_element_type=jnp.float32)

    if att_out:                                       # attention only if requested
        att_ref, = att_out
        att = jnp.where(has_edges, p * recip, inv_n)  # edgeless row -> uniform 1/N
        att_ref[...] = att.astype(att_ref.dtype)


# ---------------------------------------------------------------------------
# VMEM budgeting
# ---------------------------------------------------------------------------
def _vmem_cap_bytes():
    try:
        return int(getattr(pltpu.get_tpu_info(), "vmem_capacity_bytes", 64 << 20))
    except Exception:
        return 64 << 20   # v7x-safe fallback


def _vmem_limit_bytes(streamed, resident, cap):
    """Streamed blocks are double-buffered by the pipeline; resident
    (constant-index) blocks are counted once. Small headroom for compiler
    scratch; capped at physical VMEM."""
    def nbytes(shape, dtype):
        size = 1
        for d in shape:
            size *= int(d)
        return size * jnp.dtype(dtype).itemsize
    total = sum(2 * nbytes(s, d) for s, d in streamed)
    total += sum(nbytes(s, d) for s, d in resident)
    total += 4 << 20
    return min(total, cap)


# ---------------------------------------------------------------------------
# Wrapper
# ---------------------------------------------------------------------------
def gat_forward(h, node_adj, edge_adj, w_att, a, *, alpha=0.2, concat=False,
                tile_n=256, mxu_dtype=jnp.float32,
                assume_signed_adjacency=True,
                return_attention=True, attention_dtype=jnp.float32):
    """GAT forward.

    assume_signed_adjacency=True (precondition: node_adj / edge_adj entries in
    {-1, 0, +1}) streams the adjacency matrices as bf16 (exact) and skips the
    in-kernel sign(); set it to False for arbitrary-valued adjacency.
    tile_n: row-tile of the (N,N) streams -- 256-512 on v5e/v6e (128 MiB VMEM),
    keep <=256 in f32 at large N on v7x (64 MiB VMEM).
    """
    h = jnp.asarray(h, jnp.float32)
    w_att = jnp.asarray(w_att, jnp.float32)
    n, f_in = h.shape
    f_out = w_att.shape[1]
    a_t = jnp.asarray(a, jnp.float32).reshape(1, f_out)

    adj_dtype = jnp.bfloat16 if assume_signed_adjacency else jnp.float32
    apply_sign = not assume_signed_adjacency

    # lane-aligned row tile; pad N up to a multiple of it. Zero padding is
    # inert: sign(0)=0 in stage 1, edge mask 0 in stage 2; padded rows/cols
    # are sliced off at the end.
    tn = max(128, (int(tile_n) // 128) * 128)
    np_ = pl.cdiv(n, tn) * tn
    grid = (np_ // tn,)
    f32 = jnp.float32

    def pad2(x, rows, cols):
        return jnp.pad(x, ((0, rows - x.shape[0]), (0, cols - x.shape[1])))

    h_pad = pad2(h, np_, f_in)
    nadj_p = pad2(jnp.asarray(node_adj).astype(adj_dtype), np_, np_)
    eadj_p = pad2(jnp.asarray(edge_adj).astype(adj_dtype), np_, np_)

    # hoisted out of the stage-1 grid: tiny (N, F_out) matmul, done once by XLA
    h_att = (h_pad @ w_att).astype(mxu_dtype)
    h_agg = h_pad.astype(mxu_dtype)                   # resident stage-2 operand

    cap = _vmem_cap_bytes()

    # ---- stage 1: per-node scores ------------------------------------------
    scores = pl.pallas_call(
        functools.partial(gat_scores_kernel, alpha=alpha,
                          apply_sign=apply_sign, mxu_dtype=mxu_dtype),
        out_shape=jax.ShapeDtypeStruct((1, np_), f32),
        grid_spec=pltpu.PrefetchScalarGridSpec(
            num_scalar_prefetch=0,
            grid=grid,
            in_specs=[
                pl.BlockSpec((tn, np_), lambda i: (i, 0)),      # node_adj (streamed)
                pl.BlockSpec((np_, f_out), lambda i: (0, 0)),   # h @ W_att (resident)
                pl.BlockSpec((1, f_out), lambda i: (0, 0)),     # a^T (resident)
            ],
            out_specs=pl.BlockSpec((1, tn), lambda i: (0, i)),
        ),
        compiler_params=pltpu.CompilerParams(
            dimension_semantics=("parallel",),
            vmem_limit_bytes=_vmem_limit_bytes(
                streamed=[((tn, np_), adj_dtype), ((1, tn), f32)],
                resident=[((np_, f_out), mxu_dtype), ((1, f_out), f32)],
                cap=cap),
        ),
    )(nadj_p, h_att, a_t)

    # O(N) softmax numerator, computed once in plain XLA (global-max shift is
    # ratio-identical to the reference's per-row max).
    exp_s = jnp.exp(scores - jnp.max(scores))         # (1, Np) f32

    # ---- stage 2: masked softmax + aggregation ------------------------------
    hprime_t_shape = jax.ShapeDtypeStruct((f_in, np_), f32)
    hprime_spec = pl.BlockSpec((f_in, tn), lambda i: (0, i))
    if return_attention:
        out_shape = (hprime_t_shape,
                     jax.ShapeDtypeStruct((np_, np_), attention_dtype))
        out_specs = [hprime_spec, pl.BlockSpec((tn, np_), lambda i: (i, 0))]
        streamed = [((tn, np_), adj_dtype), ((f_in, tn), f32),
                    ((tn, np_), attention_dtype)]
    else:
        out_shape = hprime_t_shape
        out_specs = hprime_spec
        streamed = [((tn, np_), adj_dtype), ((f_in, tn), f32)]

    result = pl.pallas_call(
        functools.partial(gat_attention_kernel, mxu_dtype=mxu_dtype,
                          inv_n=float(1.0 / n)),
        out_shape=out_shape,
        grid_spec=pltpu.PrefetchScalarGridSpec(
            num_scalar_prefetch=0,
            grid=grid,
            in_specs=[
                pl.BlockSpec((1, np_), lambda i: (0, 0)),       # exp_s (resident)
                pl.BlockSpec((tn, np_), lambda i: (i, 0)),      # edge_adj (streamed)
                pl.BlockSpec((np_, f_in), lambda i: (0, 0)),    # h (resident)
            ],
            out_specs=out_specs,
        ),
        compiler_params=pltpu.CompilerParams(
            dimension_semantics=("parallel",),
            vmem_limit_bytes=_vmem_limit_bytes(
                streamed=streamed,
                resident=[((1, np_), f32), ((np_, f_in), mxu_dtype)],
                cap=cap),
        ),
    )(exp_s, eadj_p, h_agg)

    if return_attention:
        hprime_t, attention = result
        attention = attention[:n, :n]
    else:
        hprime_t, attention = result, None

    h_prime = hprime_t[:, :n].T                       # (N, F_in)
    if concat:
        h_prime = jax.nn.elu(h_prime)
    return h_prime, attention


# ---------------------------------------------------------------------------
# test harness
# ---------------------------------------------------------------------------
def _xavier_uniform(key, shape, gain):
    fan_in, fan_out = shape[0], shape[1]
    limit = gain * jnp.sqrt(6.0 / (fan_in + fan_out))
    return jax.random.uniform(key, shape, jnp.float32, -limit, limit)


def _reference(h, node_adj, edge_adj, w_att, a, alpha=0.2):
    # pure-JAX reference mirroring the PyTorch forward (eval mode)
    h_att = h @ w_att
    n = h.shape[0]
    h_plus = (node_adj > 0).astype(jnp.float32) @ h_att
    h_minus = (node_adj < 0).astype(jnp.float32) @ h_att
    a_input = jnp.abs(h_plus - h_minus)
    s = a_input @ a                                              # (N, 1)
    e = jnp.where(s > 0, s, alpha * s)
    e = jnp.tile(e.T, (n, 1))                                    # (N, N)
    logits = jnp.where(edge_adj != 0, e, jnp.float32(-9.0e15))
    att = jax.nn.softmax(logits, axis=1)
    h_prime = (att * edge_adj) @ h
    return h_prime, att


if __name__ == "__main__":
    N, F_IN, F_OUT = 256, 16, 8     # N large enough to exercise the row-tiled grid
    TILE_N = 128
    ALPHA = 0.2

    key = jax.random.PRNGKey(0)
    k_h, k_w, k_a, k_nadj, k_eadj = jax.random.split(key, 5)

    # deterministic parameter init (xavier_uniform, gain=1.414, as in __init__)
    w_att = _xavier_uniform(k_w, (F_IN, F_OUT), gain=1.414)
    a_vec = _xavier_uniform(k_a, (F_OUT, 1), gain=1.414)

    # inputs: node features + signed adjacency matrices with {-1, 0, +1} entries
    h = jax.random.normal(k_h, (N, F_IN), jnp.float32)
    node_adj = jax.random.randint(k_nadj, (N, N), -1, 2).astype(jnp.float32)
    edge_adj = jax.random.randint(k_eadj, (N, N), -1, 2).astype(jnp.float32)

    h_prime, attention = gat_forward(h, node_adj, edge_adj, w_att, a_vec,
                                     alpha=ALPHA, concat=False, tile_n=TILE_N,
                                     assume_signed_adjacency=True,
                                     return_attention=True)
    jax.block_until_ready((h_prime, attention))

    ref_hp, ref_att = _reference(h, node_adj, edge_adj, w_att, a_vec, ALPHA)
    # tolerances account for the approx=True EUP reciprocal in the softmax divide
    assert jnp.allclose(attention, ref_att, atol=1e-3, rtol=1e-2)
    assert jnp.allclose(h_prime, ref_hp, atol=5e-3, rtol=5e-3)

    print("KERNEL_OK")
</pallas_src>

<mosaic_0001>
module attributes {stable_mosaic.version = 11 : i64} {
  func.func @gat_scores_kernel(%arg0: i32, %arg1: memref<128x256xbf16, #tpu.memory_space<vmem>>, %arg2: memref<256x8xf32, #tpu.memory_space<vmem>>, %arg3: memref<1x8xf32, #tpu.memory_space<vmem>>, %arg4: memref<1x128xf32, #tpu.memory_space<vmem>>) attributes {dimension_semantics = [#tpu.dimension_semantics<parallel>], iteration_bounds = array<i64: 2>, scalar_prefetch = 0 : i64, scratch_operands = 0 : i64, tpu.core_type = #tpu.core_type<tc>, window_params = [{transform_indices = @transform_0, window_bounds = array<i64: 128, 256>}, {pipeline_mode = #tpu.pipeline_mode<synchronous>, transform_indices = @transform_1, window_bounds = array<i64: 256, 8>}, {pipeline_mode = #tpu.pipeline_mode<synchronous>, transform_indices = @transform_2, window_bounds = array<i64: 1, 8>}, {transform_indices = @transform_3, window_bounds = array<i64: 1, 128>}]} {
    %c0 = arith.constant 0 : index
    %c0_0 = arith.constant 0 : index
    %0 = vector.load %arg1[%c0, %c0_0] : memref<128x256xbf16, #tpu.memory_space<vmem>>, vector<128x256xbf16>
    %c0_1 = arith.constant 0 : index
    %c0_2 = arith.constant 0 : index
    %1 = vector.load %arg2[%c0_1, %c0_2] : memref<256x8xf32, #tpu.memory_space<vmem>>, vector<256x8xf32>
    %c0_3 = arith.constant 0 : index
    %c0_4 = arith.constant 0 : index
    %2 = vector.load %arg3[%c0_3, %c0_4] : memref<1x8xf32, #tpu.memory_space<vmem>>, vector<1x8xf32>
    %3 = arith.extf %0 : vector<128x256xbf16> to vector<128x256xf32>
    %cst = arith.constant dense<0.000000e+00> : vector<128x8xf32>
    %4 = tpu.matmul %3, %1, %cst {dimension_numbers = #tpu.dot_dimension_numbers<[1], [0], [0], [1], [0, 0, 1, 1], [], []>} : vector<128x256xf32>, vector<256x8xf32>, vector<128x8xf32> -> vector<128x8xf32>
    %5 = math.absf %4 : vector<128x8xf32>
    %cst_5 = arith.constant dense<0.000000e+00> : vector<1x128xf32>
    %6 = tpu.matmul %2, %5, %cst_5 {dimension_numbers = #tpu.dot_dimension_numbers<[1], [1], [0], [0], [0, 0, 1, 0], [], []>} : vector<1x8xf32>, vector<128x8xf32>, vector<1x128xf32> -> vector<1x128xf32>
    %cst_6 = arith.constant 0.000000e+00 : f32
    %7 = vector.broadcast %cst_6 : f32 to vector<1x128xf32>
    %8 = arith.cmpf ogt, %6, %7 : vector<1x128xf32>
    %cst_7 = arith.constant 2.000000e-01 : f32
    %9 = vector.broadcast %cst_7 : f32 to vector<1x128xf32>
    %10 = arith.mulf %9, %6 : vector<1x128xf32>
    %11 = arith.select %8, %6, %10 : vector<1x128xi1>, vector<1x128xf32>
    %c0_8 = arith.constant 0 : index
    %c0_9 = arith.constant 0 : index
    %12 = vector.load %arg4[%c0_8, %c0_9] : memref<1x128xf32, #tpu.memory_space<vmem>>, vector<1x128xf32>
    tpu.vector_store %arg4[%c0_8, %c0_9], %11 {strides = array<i32>} : memref<1x128xf32, #tpu.memory_space<vmem>>, vector<1x128xf32>,
    return
  }
  func.func @transform_0(%arg0: i32) -> (i32, i32) {
    %c0_i32 = arith.constant 0 : i32
    %c0_i32_0 = arith.constant 0 : i32
    return %arg0, %c0_i32 : i32, i32
  }
  func.func @transform_1(%arg0: i32) -> (i32, i32) {
    %c0_i32 = arith.constant 0 : i32
    %c0_i32_0 = arith.constant 0 : i32
    %c0_i32_1 = arith.constant 0 : i32
    return %c0_i32, %c0_i32_0 : i32, i32
  }
  func.func @transform_2(%arg0: i32) -> (i32, i32) {
    %c0_i32 = arith.constant 0 : i32
    %c0_i32_0 = arith.constant 0 : i32
    %c0_i32_1 = arith.constant 0 : i32
    return %c0_i32, %c0_i32_0 : i32, i32
  }
  func.func @transform_3(%arg0: i32) -> (i32, i32) {
    %c0_i32 = arith.constant 0 : i32
    %c0_i32_0 = arith.constant 0 : i32
    return %c0_i32, %arg0 : i32, i32
  }
}

</mosaic_0001>

<bundles_post_ra>
// kernel: tpu_custom_call.1
= control target key start
LH: loop header
LB: loop body
LE: loop exit
PB: predicated region body
PF: predicated region fallthrough
CT: control target
= control target key end

     0   :  { %8 = vsyncpa [#allocation3], 0  ;;  %s1156_s0 = inlined_call_operand.vmem [shape: bf16[256,256], index: 0, kind: input, shape index: {}]   ;;  %s1157_s1 = inlined_call_operand.vmem [shape: f32[256,8], index: 1, kind: input, shape index: {}]   ;;  %s1158_s2 = inlined_call_operand.vmem [shape: f32[1,8], index: 2, kind: input, shape index: {}]   ;;  %s1159_s3 = inlined_call_operand.hbm [shape: f32[1,256], index: 3, kind: output, shape index: {}]  }
   0x1   :  { %10 = vsyncpa [#allocation3 + $0x1], 0  ;;  %s895_s12 = smov 0   ;;  %s897_s13 = smov 0  }
   0x2   :  { %s899_s14 = smov 0   ;;  %s901_s15 = smov 0  }
   0x3 LB: > { %s608_s16 = sadd.s32 4294967295, %s870_s15   ;;  %s609_s17 = sadd.s32 4294967294, %s870_s15   ;;  %s870_s15 = sphi %s901_s15, %s1165_s15   ;;  %s866_s14 = sphi %s899_s14, %s1164_s14   ;;  %s862_s13 = sphi %s897_s13, %s1163_s13   ;;  %s858_s12 = sphi %s895_s12, %s1162_s12  }
   0x4   : > { %s918_s18 = sadd.s32 1, %s870_s15   ;;  %s91_s19 = sadd.s32 1, %s866_s14 }
   0x5   : > { %s88_s20 = ssub.s32 %s870_s15, %s918_s18  ;;  %p101_p0 = scmp.ne.s32.totalorder %s866_s14, %s862_s13 }
   0x6   : > { %p89_p1 = scmp.eq.s32.totalorder %s88_s20, 0  ;;  %p102_p2 = scmp.eq.s32.totalorder %s608_s16, 1 }
   0x7   : > { %p107_p3 = scmp.ne.s32.totalorder %s862_s13, %s858_s12  ;;  %p108_p4 = scmp.eq.s32.totalorder %s609_s17, 1 }
   0x8   : > { %s928_s21 = scalar_select %p89_p1, %s866_s14, %s91_s19  }
   0x9   : > { %p930_p5 = por %p102_p2, %p101_p0  ;;  %p934_p6 = por %p108_p4, %p107_p3 }
   0xa   : > { %p612_p7 = scmp.ge.s32.totalorder %s870_s15, 1  ;;  %p142_p8 = scmp.lt.s32.totalorder %s870_s15, 3 }
   0xc   : > { %p143_p9 = pnand %p612_p7, %p142_p8 }
   0xd   : > { %s949_s30 = sshll.u32 (!%p143_p9), %s608_s16, 4  ;;  %s164_s24 = sand.u32 (!%p143_p9), 1, %s862_s13  }
   0xe   : > { %146 = sbr.rel (%p143_p9) target bundleno = 583 (0x247), region = 32  ;;  %p167_p10 = scmp.lt.s32.totalorder (!%p143_p9), %s949_s30, 31 }
   0xf   : > { %s165_s25 = scalar_lea.vmem (!%p143_p9), [#allocation2], %s164_s24  ;;  %s1121_s29 = scalar_lea.hbm (!%p143_p9), %s1159_s3, %s949_s30 }
  0x10   : > { %s554_s26 = sshll.u32 (!%p143_p9), %s165_s25, 4  ;;  %s542_s5 = scalar_lea.sflag (!%p143_p9), [#allocation3], %s164_s24  ;;  %s555_s26 = int_to_ptr.vmem [resolvable:$true] %s554_s26 }
  0x11   : > { %s810_s6 = scalar_lea.vmem (!%p143_p9), %s555_s26, 16  ;;  %s874_s7 = smov (!%p143_p9), [#allocation2]  }
  0x12   : > { %p811_p11 = scmp.ne.s32.totalorder (!%p143_p9), %s555_s26, %s810_s6  ;;  %s814_s8 = sshll.u32 (!%p143_p9), %s874_s7, 4  ;;  %s815_s8 = int_to_ptr.vmem [resolvable:$false] %s814_s8 }
  0x13   : > { %v220_v0 = vld [vmem:[%s1157_s1 + $0xf8] sm:$0xff]  ;;  %v219_v2 = vld [vmem:[%s1157_s1 + $0xf0] sm:$0xff]  ;;  %v218_v4 = vld [vmem:[%s1157_s1 + $0xe8] sm:$0xff]  ;;  %s168_s10 = scalar_select %p167_p10, %s949_s30, 31  ;;  %vm873_vm0 = vmmov 0   ;;  %vm415_vm1 = vcmask 64512  }
  0x14   : > { %v204_v1 = vld [vmem:[%s1157_s1 + $0x78] sm:$0xff]  ;;  %637 = vmatprep.subr.mxu0 %v220_v0  ;;  %v203_v3 = vld [vmem:[%s1157_s1 + $0x70] sm:$0xff]  ;;  %v202_v5 = vld [vmem:[%s1157_s1 + $0x68] sm:$0xff]  ;;  %p812_p12 = pnand %p811_p11, %p930_p5  ;;  %s816_s9 = scalar_lea.vmem %s815_s8, 32 }
  0x15   : > { %638 = vmatpush3.msra.mxu0 %v204_v1  ;;  %v217_v6 = vld [vmem:[%s1157_s1 + $0xe0] sm:$0xff]  ;;  %s636_s20 = sshll.u32 %s168_s10, 3  ;;  %v216_v8 = vld [vmem:[%s1157_s1 + $0xd8] sm:$0xff]  ;;  %v215_v10 = vld [vmem:[%s1157_s1 + $0xd0] sm:$0xff]  ;;  %p817_p0 = scmp.lt.s32.totalorder %s555_s26, %s815_s8 }
  0x16   : > { %639 = vmatprep.subr.mxu0 %v219_v2  ;;  %v201_v7 = vld [vmem:[%s1157_s1 + $0x60] sm:$0xff]  ;;  %v200_v9 = vld [vmem:[%s1157_s1 + $0x58] sm:$0xff]  ;;  %s977_s4 = scalar_lea.vmem %s1156_s0, %s636_s20  ;;  %v199_v11 = vld [vmem:[%s1157_s1 + $0x50] sm:$0xff]  ;;  %p813_p13 = pneg %p812_p12 }
  0x17   : > { %640 = vmatpush3.msra.mxu0 %v203_v3  ;;  %v214_v12 = vld [vmem:[%s1157_s1 + $0xc8] sm:$0xff]  ;;  %v173_v13 = vld [vmem:[%s977_s4] sm:$0xff]  ;;  %v212_v18 = vld [vmem:[%s1157_s1 + $0xb8] sm:$0xff]  ;;  %p818_p1 = scmp.lt.s32.totalorder %s816_s9, %s810_s6 }
  0x18   : > { %641 = vmatprep.subr.mxu0 %v218_v4  ;;  %v198_v14 = vld [vmem:[%s1157_s1 + $0x48] sm:$0xff]  ;;  %v223_v15 = vunpack.c.h.bf16 %v173_v13  ;;  %v213_v16 = vld [vmem:[%s1157_s1 + $0xc0] sm:$0xff]  ;;  %v196_v19 = vld [vmem:[%s1157_s1 + $0x38] sm:$0xff]  ;;  %v222_v35 = vunpack.c.l.bf16 %v173_v13 }
  0x19   : > { %642 = vmatpush3.msra.mxu0 %v202_v5  ;;  %v197_v17 = vld [vmem:[%s1157_s1 + $0x40] sm:$0xff]  ;;  %v211_v20 = vld [vmem:[%s1157_s1 + $0xb0] sm:$0xff]  ;;  %v210_v22 = vld [vmem:[%s1157_s1 + $0xa8] sm:$0xff]  ;;  %p819_p2 = por %p818_p1, %p817_p0 }
  0x1a   : > { %643 = vmatprep.subr.mxu0 %v217_v6  ;;  %318 = vmatprep.mubr.f32.mxu0 %v223_v15  ;;  %v195_v21 = vld [vmem:[%s1157_s1 + $0x30] sm:$0xff]  ;;  %v194_v23 = vld [vmem:[%s1157_s1 + $0x28] sm:$0xff]  ;;  %v209_v24 = vld [vmem:[%s1157_s1 + $0xa0] sm:$0xff] }
  0x1b   : > { %644 = vmatpush3.msra.mxu0 %v201_v7  ;;  %v193_v25 = vld [vmem:[%s1157_s1 + $0x20] sm:$0xff]  ;;  %v208_v26 = vld [vmem:[%s1157_s1 + $0x98] sm:$0xff]  ;;  %v207_v28 = vld [vmem:[%s1157_s1 + $0x90] sm:$0xff]  ;;  %p820_p3 = pnand %p819_p2, %p813_p13 }
  0x1c   : > { %645 = vmatprep.subr.mxu0 %v216_v8  ;;  %v192_v27 = vld [vmem:[%s1157_s1 + $0x18] sm:$0xff]  ;;  %v191_v29 = vld [vmem:[%s1157_s1 + $0x10] sm:$0xff]  ;;  %v206_v30 = vld [vmem:[%s1157_s1 + $0x88] sm:$0xff] }
  0x1d   : > { %646 = vmatpush3.msra.mxu0 %v200_v9  ;;  %v190_v31 = vld [vmem:[%s1157_s1 + $0x8] sm:$0xff]  ;;  %v205_v33 = vld [vmem:[%s1157_s1 + $0x80] sm:$0xff]  ;;  %v175_v37 = vld [vmem:[%s977_s4 + $0x10] sm:$0xff] }
  0x1e   : > { %647 = vmatprep.subr.mxu0 %v215_v10  ;;  %v174_v32 = vld [vmem:[%s977_s4 + $0x8] sm:$0xff]  ;;  %v189_v34 = vld [vmem:[%s1157_s1] sm:$0xff]  ;;  %v227_v39 = vunpack.c.h.bf16 %v175_v37  ;;  %v176_v40 = vld [vmem:[%s977_s4 + $0x18] sm:$0xff]  ;;  %v226_v41 = vunpack.c.l.bf16 %v175_v37 }
  0x1f   : > { %648 = vmatpush3.msra.mxu0 %v199_v11  ;;  %v225_v36 = vunpack.c.h.bf16 %v174_v32  ;;  %v224_v38 = vunpack.c.l.bf16 %v174_v32  ;;  %v229_v42 = vunpack.c.h.bf16 %v176_v40  ;;  %v177_v43 = vld [vmem:[%s977_s4 + $0x20] sm:$0xff]  ;;  %v228_v44 = vunpack.c.l.bf16 %v176_v40  ;;  %v178_v46 = vld [vmem:[%s977_s4 + $0x28] sm:$0xff]  ;;  %v179_v49 = vld [vmem:[%s977_s4 + $0x30] sm:$0xff] }
  0x20   : > { %649 = vmatprep.subr.mxu0 %v214_v12  ;;  %v231_v45 = vunpack.c.h.bf16 %v177_v43  ;;  %v230_v47 = vunpack.c.l.bf16 %v177_v43  ;;  %v233_v48 = vunpack.c.h.bf16 %v178_v46  ;;  %v232_v50 = vunpack.c.l.bf16 %v178_v46  ;;  %v180_v52 = vld [vmem:[%s977_s4 + $0x38] sm:$0xff]  ;;  %v181_v55 = vld [vmem:[%s977_s4 + $0x40] sm:$0xff]  ;;  %v182_v58 = vld [vmem:[%s977_s4 + $0x48] sm:$0xff] }
  0x21   : > { %650 = vmatpush3.msra.mxu0 %v198_v14  ;;  %v235_v51 = vunpack.c.h.bf16 %v179_v49  ;;  %v234_v53 = vunpack.c.l.bf16 %v179_v49  ;;  %v237_v54 = vunpack.c.h.bf16 %v180_v52  ;;  %v236_v56 = vunpack.c.l.bf16 %v180_v52  ;;  %v183_v61 = vld [vmem:[%s977_s4 + $0x50] sm:$0xff]  ;;  %v184_v0 = vld [vmem:[%s977_s4 + $0x58] sm:$0xff]  ;;  %v185_v3 = vld [vmem:[%s977_s4 + $0x60] sm:$0xff] }
  0x22   : > { %651 = vmatprep.subr.mxu0 %v213_v16  ;;  %v239_v57 = vunpack.c.h.bf16 %v181_v55  ;;  %v238_v59 = vunpack.c.l.bf16 %v181_v55  ;;  %v241_v60 = vunpack.c.h.bf16 %v182_v58  ;;  %v240_v62 = vunpack.c.l.bf16 %v182_v58  ;;  %v186_v6 = vld [vmem:[%s977_s4 + $0x68] sm:$0xff]  ;;  %v187_v9 = vld [vmem:[%s977_s4 + $0x70] sm:$0xff]  ;;  %v188_v12 = vld [vmem:[%s977_s4 + $0x78] sm:$0xff] }
  0x23   : > { %652 = vmatpush3.msra.mxu0 %v197_v17  ;;  %v243_v63 = vunpack.c.h.bf16 %v183_v61  ;;  %v242_v1 = vunpack.c.l.bf16 %v183_v61  ;;  %v245_v2 = vunpack.c.h.bf16 %v184_v0  ;;  %v244_v4 = vunpack.c.l.bf16 %v184_v0 }
  0x24   : > { %653 = vmatprep.subr.mxu0 %v212_v18  ;;  %v247_v5 = vunpack.c.h.bf16 %v185_v3  ;;  %v246_v7 = vunpack.c.l.bf16 %v185_v3  ;;  %v249_v8 = vunpack.c.h.bf16 %v186_v6  ;;  %v248_v10 = vunpack.c.l.bf16 %v186_v6 }
  0x25   : > { %654 = vmatpush3.msra.mxu0 %v196_v19  ;;  %v251_v11 = vunpack.c.h.bf16 %v187_v9  ;;  %v250_v13 = vunpack.c.l.bf16 %v187_v9  ;;  %v253_v14 = vunpack.c.h.bf16 %v188_v12  ;;  %v252_v15 = vunpack.c.l.bf16 %v188_v12 }
  0x26   : > { %655 = vmatprep.subr.mxu0 %v211_v20  ;;  %v872_v16 = vmov 0.0  }
  0x27   : > { %656 = vmatpush3.msra.mxu0 %v195_v21  ;;  %734 = vmatprep.subr.mxu1 %v872_v16 }
  0x28   : > { %657 = vmatprep.subr.mxu0 %v210_v22  ;;  %766 = vmatprep.mubr.msk.f32.mxu1 %vm873_vm0, %v872_v16 }
  0x29   : > { %658 = vmatpush3.msra.mxu0 %v194_v23 }
  0x2a   : > { %659 = vmatprep.subr.mxu0 %v209_v24 }
  0x2b   : > { %660 = vmatpush3.msra.mxu0 %v193_v25 }
  0x2c   : > { %661 = vmatprep.subr.mxu0 %v208_v26 }
  0x2d   : > { %662 = vmatpush3.msra.mxu0 %v192_v27 }
  0x2e   : > { %663 = vmatprep.subr.mxu0 %v207_v28 }
  0x2f   : > { %664 = vmatpush3.msra.mxu0 %v191_v29 }
  0x30   : > { %665 = vmatprep.subr.mxu0 %v206_v30 }
  0x31   : > { %666 = vmatpush3.msra.mxu0 %v190_v31 }
  0x32   : > { %667 = vmatprep.subr.mxu0 %v205_v33 }
  0x33   : > { %668 = vmatpush3.msra.mxu0 %v189_v34 }
  0x34   : > { %319 = vmatmul.mubr.f32.vlgmr.msra.gmra.mxu0 %v222_v35 }
  0x35   : > { %323 = vmatprep.mubr.f32.mxu0 %v225_v36 }
  0x38   : > { %324 = vmatmul.mubr.f32.gmra.mxu0 %v224_v38 }
  0x39   : > { %328 = vmatprep.mubr.f32.mxu0 %v227_v39 }
  0x3c   : > { %329 = vmatmul.mubr.f32.gmra.mxu0 %v226_v41 }
  0x3d   : > { %333 = vmatprep.mubr.f32.mxu0 %v229_v42 }
  0x40   : > { %334 = vmatmul.mubr.f32.gmra.mxu0 %v228_v44 }
  0x41   : > { %338 = vmatprep.mubr.f32.mxu0 %v231_v45 }
  0x44   : > { %339 = vmatmul.mubr.f32.gmra.mxu0 %v230_v47 }
  0x45   : > { %343 = vmatprep.mubr.f32.mxu0 %v233_v48 }
  0x48   : > { %344 = vmatmul.mubr.f32.gmra.mxu0 %v232_v50 }
  0x49   : > { %348 = vmatprep.mubr.f32.mxu0 %v235_v51 }
  0x4c   : > { %349 = vmatmul.mubr.f32.gmra.mxu0 %v234_v53 }
  0x4d   : > { %353 = vmatprep.mubr.f32.mxu0 %v237_v54 }
  0x50   : > { %354 = vmatmul.mubr.f32.gmra.mxu0 %v236_v56 }
  0x51   : > { %358 = vmatprep.mubr.f32.mxu0 %v239_v57 }
  0x54   : > { %359 = vmatmul.mubr.f32.gmra.mxu0 %v238_v59 }
  0x55   : > { %363 = vmatprep.mubr.f32.mxu0 %v241_v60 }
  0x58   : > { %364 = vmatmul.mubr.f32.gmra.mxu0 %v240_v62 }
  0x59   : > { %368 = vmatprep.mubr.f32.mxu0 %v243_v63 }
  0x5c   : > { %369 = vmatmul.mubr.f32.gmra.mxu0 %v242_v1 }
  0x5d   : > { %373 = vmatprep.mubr.f32.mxu0 %v245_v2 }
  0x60   : > { %374 = vmatmul.mubr.f32.gmra.mxu0 %v244_v4 }
  0x61   : > { %378 = vmatprep.mubr.f32.mxu0 %v247_v5 }
  0x64   : > { %379 = vmatmul.mubr.f32.gmra.mxu0 %v246_v7 }
  0x65   : > { %383 = vmatprep.mubr.f32.mxu0 %v249_v8 }
  0x68   : > { %384 = vmatmul.mubr.f32.gmra.mxu0 %v248_v10 }
  0x69   : > { %388 = vmatprep.mubr.f32.mxu0 %v251_v11 }
  0x6c   : > { %389 = vmatmul.mubr.f32.gmra.mxu0 %v250_v13 }
  0x6d   : > { %393 = vmatprep.mubr.f32.mxu0 %v253_v14 }
  0x70   : > { %394 = vmatmul.mubr.f32.gmra.mxu0 %v252_v15 }
  0xf4   : > { %v669_v17 = vpop.f32.mrf.mxu0 }
  0xf6   : > { %v670_v18 = vpop.f32.mrf.mxu0 }
  0xf7   : > { %v1063_v19 = vadd.f32 %v670_v18, %v669_v17  ;;  %v221_v18 = vld [vmem:[%s1158_s2] sm:$0x1] }
  0xf8   : > { %v672_v20 = vpop.f32.mrf.mxu0 }
  0xf9   : > { %v399_v17 = vand.u32 2147483647, %v1063_v19 }
  0xfa   : > { %v673_v21 = vpop.f32.mrf.mxu0 }
  0xfb   : > { %v1065_v22 = vadd.f32 %v673_v21, %v672_v20 }
  0xfc   : > { %v675_v23 = vpop.f32.mrf.mxu0 }
  0xfd   : > { %v400_v15 = vand.u32 2147483647, %v1065_v22 }
  0xfe   : > { %v676_v24 = vpop.f32.mrf.mxu0 }
  0xff   : > { %v1067_v25 = vadd.f32 %v676_v24, %v675_v23 }
 0x100   : > { %v678_v26 = vpop.f32.mrf.mxu0 }
 0x101   : > { %v401_v14 = vand.u32 2147483647, %v1067_v25 }
 0x102   : > { %v679_v27 = vpop.f32.mrf.mxu0 }
 0x103   : > { %v1069_v28 = vadd.f32 %v679_v27, %v678_v26 }
 0x104   : > { %v681_v29 = vpop.f32.mrf.mxu0 }
 0x105   : > { %v402_v13 = vand.u32 2147483647, %v1069_v28 }
 0x106   : > { %v682_v30 = vpop.f32.mrf.mxu0 }
 0x107   : > { %v1071_v31 = vadd.f32 %v682_v30, %v681_v29 }
 0x108   : > { %v684_v32 = vpop.f32.mrf.mxu0 }
 0x109   : > { %v403_v12 = vand.u32 2147483647, %v1071_v31 }
 0x10a   : > { %v685_v33 = vpop.f32.mrf.mxu0 }
 0x10b   : > { %v1073_v34 = vadd.f32 %v685_v33, %v684_v32 }
 0x10c   : > { %v687_v35 = vpop.f32.mrf.mxu0 }
 0x10d   : > { %v404_v11 = vand.u32 2147483647, %v1073_v34 }
 0x10e   : > { %v688_v36 = vpop.f32.mrf.mxu0 }
 0x10f   : > { %v689_v37 = vadd.f32 %v688_v36, %v687_v35 }
 0x110   : > { %v690_v38 = vpop.f32.mrf.mxu0 }
 0x111   : > { %v405_v10 = vand.u32 2147483647, %v689_v37 }
 0x112   : > { %v691_v39 = vpop.f32.mrf.mxu0 }
 0x113   : > { %v692_v40 = vadd.f32 %v691_v39, %v690_v38 }
 0x114   : > { %v693_v41 = vpop.f32.mrf.mxu0 }
 0x115   : > { %v406_v9 = vand.u32 2147483647, %v692_v40 }
 0x116   : > { %v694_v42 = vpop.f32.mrf.mxu0 }
 0x117   : > { %v695_v6 = vadd.f32 %v694_v42, %v693_v41 }
 0x118   : > { %v696_v43 = vpop.f32.mrf.mxu0 }
 0x119   : > { %v407_v8 = vand.u32 2147483647, %v695_v6 }
 0x11a   : > { %v697_v44 = vpop.f32.mrf.mxu0 }
 0x11b   : > { %v698_v4 = vadd.f32 %v697_v44, %v696_v43 }
 0x11c   : > { %v699_v45 = vpop.f32.mrf.mxu0 }
 0x11d   : > { %v408_v7 = vand.u32 2147483647, %v698_v4 }
 0x11e   : > { %v700_v46 = vpop.f32.mrf.mxu0 }
 0x11f   : > { %v701_v2 = vadd.f32 %v700_v46, %v699_v45 }
 0x120   : > { %v702_v47 = vpop.f32.mrf.mxu0 }
 0x121   : > { %v409_v5 = vand.u32 2147483647, %v701_v2 }
 0x122   : > { %v703_v48 = vpop.f32.mrf.mxu0 }
 0x123   : > { %v704_v0 = vadd.f32 %v703_v48, %v702_v47 }
 0x124   : > { %v705_v49 = vpop.f32.mrf.mxu0 }
 0x125   : > { %v410_v3 = vand.u32 2147483647, %v704_v0 }
 0x126   : > { %v706_v50 = vpop.f32.mrf.mxu0 }
 0x127   : > { %v707_v62 = vadd.f32 %v706_v50, %v705_v49 }
 0x128   : > { %v708_v51 = vpop.f32.mrf.mxu0 }
 0x129   : > { %v411_v1 = vand.u32 2147483647, %v707_v62 }
 0x12a   : > { %v709_v52 = vpop.f32.mrf.mxu0 }
 0x12b   : > { %v710_v60 = vadd.f32 %v709_v52, %v708_v51 }
 0x12c   : > { %v711_v53 = vpop.f32.mrf.mxu0 }
 0x12d   : > { %v412_v63 = vand.u32 2147483647, %v710_v60 }
 0x12e   : > { %v712_v54 = vpop.f32.mrf.mxu0 }
 0x12f   : > { %v713_v58 = vadd.f32 %v712_v54, %v711_v53 }
 0x130   : > { %v714_v55 = vpop.f32.mrf.mxu0 }
 0x131   : > { %v413_v61 = vand.u32 2147483647, %v713_v58 }
 0x132   : > { %v715_v56 = vpop.f32.mrf.mxu0 }
 0x133   : > { %v716_v57 = vadd.f32 %v715_v56, %v714_v55 }
 0x135   : > { %v414_v59 = vand.u32 2147483647, %v716_v57 }
 0x137   : > { %735 = vmatpush3.xpose.msk.msra.mxu1 %vm415_vm1, %v414_v59 }
 0x138   : > { %736 = vmatprep.subr.mxu1 %v872_v16 }
 0x13b   : > { %737 = vmatpush3.xpose.msk.msra.mxu1 %vm415_vm1, %v413_v61 }
 0x13c   : > { %738 = vmatprep.subr.mxu1 %v872_v16 }
 0x13f   : > { %739 = vmatpush3.xpose.msk.msra.mxu1 %vm415_vm1, %v412_v63 }
 0x140   : > { %740 = vmatprep.subr.mxu1 %v872_v16 }
 0x143   : > { %741 = vmatpush3.xpose.msk.msra.mxu1 %vm415_vm1, %v411_v1 }
 0x144   : > { %742 = vmatprep.subr.mxu1 %v872_v16 }
 0x147   : > { %743 = vmatpush3.xpose.msk.msra.mxu1 %vm415_vm1, %v410_v3 }
 0x148   : > { %744 = vmatprep.subr.mxu1 %v872_v16 }
 0x14b   : > { %745 = vmatpush3.xpose.msk.msra.mxu1 %vm415_vm1, %v409_v5 }
 0x14c   : > { %746 = vmatprep.subr.mxu1 %v872_v16 }
 0x14f   : > { %747 = vmatpush3.xpose.msk.msra.mxu1 %vm415_vm1, %v408_v7 }
 0x150   : > { %748 = vmatprep.subr.mxu1 %v872_v16 }
 0x153   : > { %749 = vmatpush3.xpose.msk.msra.mxu1 %vm415_vm1, %v407_v8 }
 0x154   : > { %750 = vmatprep.subr.mxu1 %v872_v16 }
 0x157   : > { %751 = vmatpush3.xpose.msk.msra.mxu1 %vm415_vm1, %v406_v9 }
 0x158   : > { %752 = vmatprep.subr.mxu1 %v872_v16 }
 0x15b   : > { %753 = vmatpush3.xpose.msk.msra.mxu1 %vm415_vm1, %v405_v10 }
 0x15c   : > { %754 = vmatprep.subr.mxu1 %v872_v16 }
 0x15f   : > { %755 = vmatpush3.xpose.msk.msra.mxu1 %vm415_vm1, %v404_v11 }
 0x160   : > { %756 = vmatprep.subr.mxu1 %v872_v16 }
 0x163   : > { %757 = vmatpush3.xpose.msk.msra.mxu1 %vm415_vm1, %v403_v12 }
 0x164   : > { %758 = vmatprep.subr.mxu1 %v872_v16 }
 0x167   : > { %759 = vmatpush3.xpose.msk.msra.mxu1 %vm415_vm1, %v402_v13 }
 0x168   : > { %760 = vmatprep.subr.mxu1 %v872_v16 }
 0x16b   : > { %761 = vmatpush3.xpose.msk.msra.mxu1 %vm415_vm1, %v401_v14 }
 0x16c   : > { %762 = vmatprep.subr.mxu1 %v872_v16 }
 0x16f   : > { %763 = vmatpush3.xpose.msk.msra.mxu1 %vm415_vm1, %v400_v15 }
 0x170   : > { %764 = vmatprep.subr.mxu1 %v872_v16 }
 0x173   : > { %765 = vmatpush3.xpose.msk.msra.mxu1 %vm415_vm1, %v399_v17 }
 0x176   : > { %767 = vmatmul.mubr.msk.f32.vlgmr.msra.gmra.mxu1 %vm415_vm1, %v221_v18 }
 0x236   : > { %v533_v20 = vpop.f32.mrf.mxu1 }
 0x237   : > { %vm537_vm2 = vcmp.gt.f32.partialorder %v533_v20, 0.0  ;;  %v538_v21 = vmul.f32 0.2, %v533_v20 }
 0x238   : > { %v768_v22 = vpop.f32.mrf.mxu1 }
 0x239   : > { %v539_v16 = vsel %vm537_vm2, %v533_v20, %v538_v21 }
 0x23a   : > { %540 = vst [vmem:[%s165_s25] sm:$0x1] %v539_v16 }
 0x23b   : > { %823 = shalt.err (!%p820_p3)
}
 0x23c   : > { %s824_s30 = scalar_lea.hbm %s1121_s29, 16  ;;  %s828_s16 = scalar_lea.hbm %s1159_s3, 32 }
 0x23d   : > { %p825_p4 = scmp.ne.s32.totalorder %s1121_s29, %s824_s30  ;;  %p829_p9 = scmp.lt.s32.totalorder %s1121_s29, %s1159_s3 }
 0x23e   : > { %p830_p10 = scmp.lt.s32.totalorder %s828_s16, %s824_s30 }
 0x23f   : > { %p826_p7 = pnand %p825_p4, %p930_p5 }
 0x240   : > { %p831_p11 = por %p830_p10, %p829_p9 }
 0x241   : > { %p827_p8 = pneg %p826_p7 }
 0x243   : > { %p832_p12 = pnand %p831_p11, %p827_p8 }
 0x245   : > { %835 = shalt.err (!%p832_p12)
}
 0x246   : > { %769 = dma.vmem_to_hbm [thread:$0]  (%p930_p5), %s555_s26, 16, %s1121_s29, %s542_s5  }
 0x247 PF: > { %p775_p13 = scmp.ge.s32.totalorder %s870_s15, 2  ;;  %s566_s4 = sand.u32 1, %s858_s12  }
 0x248   : > { %s567_s20 = scalar_lea.sflag [#allocation3], %s566_s4 }
 0x249   : > { %p772_p0 = pnand %p775_p13, %p934_p6 }
 0x24b   : > { %p773_p1 = pneg %p772_p0 }
 0x24d   : > { %853 = dma.done.wait (%p773_p1), %s567_s20, 16  }
 0x24e   : > { %855 = vsyncadd (%p773_p1), %s567_s20, 4294967280  ;;  %p13_p2 = scmp.ge.s32.totalorder %s918_s18, 4   ;;  %s1162_s12 = smov %s862_s13 }
 0x24f   : > { %s1163_s13 = smov %s866_s14  ;;  %s1164_s14 = smov %s928_s21 }
 0x250   : > { %s1165_s15 = smov %s918_s18  ;;  %15 = sbr.rel (!%p13_p2) target bundleno = 3 (0x3), region = 67 }
 0x255   :  { %571 = vsyncpa [#allocation3], 1 }
 0x256   :  { %573 = vsyncpa [#allocation3 + $0x1], 1 }

</bundles_post_ra>
